<compile_context>
chip_gen: v5e
topology: v5e:2x2
jax: 0.10.0
libtpu: 0.0.40
codegen_flags: <defaults>
</compile_context>

<pallas_src>
import functools

import jax
import jax.numpy as jnp
from jax import lax
from jax.experimental import pallas as pl
from jax.experimental.pallas import tpu as pltpu


def _temporal_block_kernel(x_ref, w1_ref, b1_ref, w2_ref, b2_ref,
                           wd_ref, bd_ref, o_ref, xh_ref, h1p_ref,
                           *, kernel_size, dilation, padding, tile_l, n_tiles):
    """Grid = (batch, time-tile).  Time tiles run sequentially per batch.

    x_ref  : (1, TILE_L, Cin_p)   bf16  current time tile of the input
    w1_ref : (K*Cin_p, Cout_p)    bf16  conv1 taps, folded along contraction
    b1_ref : (1, Cout_p)          f32
    w2_ref : (K*Cout_p, Cout_p)   bf16  conv2 taps, folded
    b2_ref : (1, Cout_p)          f32
    wd_ref : (Cin_p, Cout_p)      bf16  1x1 downsample (or identity)
    bd_ref : (1, Cout_p)          f32
    o_ref  : (1, TILE_L, Cout_p)  f32
    xh_ref : (pad + TILE_L, Cin_p)  bf16 scratch: [carried x halo ; x tile]
    h1p_ref: (pad + TILE_L, Cout_p) bf16 scratch: [carried h1 halo ; h1 tile]
    """
    K, dil, pad, L = kernel_size, dilation, padding, tile_l
    t = pl.program_id(1)

    if pad > 0:
        # Zero only the halo rows, and only once per batch element.
        @pl.when(t == 0)
        def _init_halo():
            xh_ref[pl.ds(0, pad), :] = jnp.zeros(
                (pad, xh_ref.shape[1]), xh_ref.dtype)
            h1p_ref[pl.ds(0, pad), :] = jnp.zeros(
                (pad, h1p_ref.shape[1]), h1p_ref.dtype)

    # Stage the current x tile behind the carried causal halo.
    xh_ref[pl.ds(pad, L), :] = x_ref[0]

    # ---- conv1: K dilated taps folded into one (L, K*Cin) @ (K*Cin, Cout) ---
    lhs1 = jnp.concatenate(
        [xh_ref[pl.ds(k * dil, L), :] for k in range(K)], axis=1)
    h1 = jnp.dot(lhs1, w1_ref[...], preferred_element_type=jnp.float32)
    h1 = jnp.maximum(h1 + b1_ref[0], 0.0)
    # dropout1: identity (inference / eval mode)

    # ---- conv2: same folded-tap matmul on the (halo + h1) buffer -------------
    h1p_ref[pl.ds(pad, L), :] = h1.astype(h1p_ref.dtype)
    lhs2 = jnp.concatenate(
        [h1p_ref[pl.ds(k * dil, L), :] for k in range(K)], axis=1)
    h2 = jnp.dot(lhs2, w2_ref[...], preferred_element_type=jnp.float32)
    h2 = jnp.maximum(h2 + b2_ref[0], 0.0)
    # dropout2: identity (inference / eval mode)

    # ---- residual branch: 1x1 downsample conv (identity matrix if Cin==Cout)
    res = jnp.dot(x_ref[0], wd_ref[...],
                  preferred_element_type=jnp.float32) + bd_ref[0]

    # ---- final relu, lane-dense store ---------------------------------------
    o_ref[0] = jnp.maximum(h2 + res, 0.0).astype(o_ref.dtype)

    # Carry the last `pad` timesteps of this tile into the halo rows for the
    # next (sequential) time tile of the same batch element.
    if pad > 0 and n_tiles > 1:
        xh_ref[pl.ds(0, pad), :] = xh_ref[pl.ds(L, pad), :]
        h1p_ref[pl.ds(0, pad), :] = h1p_ref[pl.ds(L, pad), :]


def _round_up(x, m):
    return (x + m - 1) // m * m


def temporal_block_pallas(x_ncl, params, *, kernel_size, dilation, padding,
                          tile_l=None):
    """x_ncl: (N, Cin, L) float32 — PyTorch Conv1d layout (NCL)."""
    N, Cin, L = x_ncl.shape
    Cout = params["b1"].shape[0]
    K, dil, pad = kernel_size, dilation, padding
    # TCN causal-conv invariant (pad both sides by `padding`, chomp the right):
    assert pad == (K - 1) * dil, "TemporalBlock expects padding == (K-1)*dilation"

    # Lane-dense channel padding (multiples of 128).
    Cin_p = _round_up(Cin, 128)
    Cout_p = _round_up(Cout, 128)

    # Pick a time-tile length: multiple of 8, >= receptive-field halo, divides L.
    if tile_l is None:
        tile_l = L
        for cand in range(8, min(L, 1024) + 1, 8):
            if L % cand == 0 and cand >= pad:
                tile_l = cand
    n_tiles = -(-L // tile_l)
    L_p = n_tiles * tile_l
    assert tile_l >= pad or n_tiles == 1, "tile_l must cover the causal halo"
    assert tile_l % 8 == 0 or n_tiles == 1, "tile_l must be a multiple of 8"

    # NCL -> NLC (channels on the 128-lane axis), bf16, zero-pad channels/time.
    # TODO(synk): accept NLC directly / fuse this transpose into the producer.
    x_nlc = jnp.transpose(x_ncl, (0, 2, 1)).astype(jnp.bfloat16)
    x_nlc = jnp.pad(x_nlc, ((0, 0), (0, L_p - L), (0, Cin_p - Cin)))

    # weight_norm reparameterization (PyTorch dim=0): w = g * v / ||v||_(Cin,K)
    def wn(v, g):
        nrm = jnp.sqrt(jnp.sum(v * v, axis=(1, 2), keepdims=True))
        return g.reshape(-1, 1, 1) * v / nrm

    def fold(w_oik, cin, cin_pp):
        # (Cout, cin, K) -> (K, cin, Cout) -> zero-pad -> (K*cin_p, Cout_p)
        w_kio = jnp.transpose(w_oik, (2, 1, 0))
        w = jnp.zeros((K, cin_pp, Cout_p), jnp.float32)
        w = w.at[:, :cin, :Cout].set(w_kio)
        return w.reshape(K * cin_pp, Cout_p).astype(jnp.bfloat16)

    w1 = fold(wn(params["w1_v"], params["w1_g"]), Cin, Cin_p)
    w2 = fold(wn(params["w2_v"], params["w2_g"]), Cout, Cout_p)

    if params.get("wd") is not None:
        wd_small = jnp.transpose(params["wd"][:, :, 0], (1, 0))   # (Cin, Cout)
        bd_small = params["bd"]
    else:
        # n_inputs == n_outputs: PyTorch uses an identity residual.
        wd_small = jnp.eye(Cin, Cout, dtype=jnp.float32)
        bd_small = jnp.zeros((Cout,), jnp.float32)
    wd = (jnp.zeros((Cin_p, Cout_p), jnp.float32)
          .at[:Cin, :Cout].set(wd_small).astype(jnp.bfloat16))

    def pad_bias(b):
        return jnp.zeros((1, Cout_p), jnp.float32).at[0, :Cout].set(b)

    b1, b2, bd = pad_bias(params["b1"]), pad_bias(params["b2"]), pad_bias(bd_small)

    kernel = functools.partial(_temporal_block_kernel,
                               kernel_size=K, dilation=dil, padding=pad,
                               tile_l=tile_l, n_tiles=n_tiles)

    out_nlc = pl.pallas_call(
        kernel,
        out_shape=jax.ShapeDtypeStruct((N, L_p, Cout_p), jnp.float32),
        grid=(N, n_tiles),
        in_specs=[
            pl.BlockSpec((1, tile_l, Cin_p), lambda b, t: (b, t, 0)),      # x
            pl.BlockSpec((K * Cin_p, Cout_p), lambda b, t: (0, 0)),        # w1
            pl.BlockSpec((1, Cout_p), lambda b, t: (0, 0)),                # b1
            pl.BlockSpec((K * Cout_p, Cout_p), lambda b, t: (0, 0)),       # w2
            pl.BlockSpec((1, Cout_p), lambda b, t: (0, 0)),                # b2
            pl.BlockSpec((Cin_p, Cout_p), lambda b, t: (0, 0)),            # wd
            pl.BlockSpec((1, Cout_p), lambda b, t: (0, 0)),                # bd
        ],
        out_specs=pl.BlockSpec((1, tile_l, Cout_p), lambda b, t: (b, t, 0)),
        scratch_shapes=[
            pltpu.VMEM((pad + tile_l, Cin_p), jnp.bfloat16),    # x halo buffer
            pltpu.VMEM((pad + tile_l, Cout_p), jnp.bfloat16),   # h1 halo buffer
        ],
        compiler_params=pltpu.CompilerParams(
            dimension_semantics=("parallel", "arbitrary"),
            vmem_limit_bytes=32 * 1024 * 1024),
    )(x_nlc, w1, b1, w2, b2, wd, bd)

    # Drop channel/time padding, back to PyTorch NCL layout.
    return jnp.transpose(out_nlc[:, :L, :Cout], (0, 2, 1))


# ------------------------------ reference (pure JAX, f32) -------------------
def temporal_block_ref(x_ncl, params, *, kernel_size, dilation, padding):
    def wn(v, g):
        nrm = jnp.sqrt(jnp.sum(v * v, axis=(1, 2), keepdims=True))
        return g.reshape(-1, 1, 1) * v / nrm

    def conv1d(x, w, b, dil, p):
        y = lax.conv_general_dilated(
            x, w, window_strides=(1,), padding=[(p, p)],
            rhs_dilation=(dil,),
            dimension_numbers=("NCH", "OIH", "NCH"))
        return y + b.reshape(1, -1, 1)

    w1 = wn(params["w1_v"], params["w1_g"])
    w2 = wn(params["w2_v"], params["w2_g"])
    h = conv1d(x_ncl, w1, params["b1"], dilation, padding)
    h = jax.nn.relu(h[:, :, :-padding])                      # chomp1 + relu1
    h = conv1d(h, w2, params["b2"], dilation, padding)
    h = jax.nn.relu(h[:, :, :-padding])                      # chomp2 + relu2
    if params.get("wd") is not None:
        res = conv1d(x_ncl, params["wd"], params["bd"], 1, 0)
    else:
        res = x_ncl
    return jax.nn.relu(h + res)


if __name__ == "__main__":
    # Small deterministic config: n_inputs=4, n_outputs=8, kernel_size=3,
    # stride=1, dilation=2, padding=(K-1)*dilation=4, L=32, tile_l=16
    # (two time tiles per batch element exercises the halo-carry path).
    N, Cin, Cout, L = 2, 4, 8, 32
    K, DIL = 3, 2
    PAD = (K - 1) * DIL

    key = jax.random.PRNGKey(0)
    ks = jax.random.split(key, 8)

    w1_v = 0.01 * jax.random.normal(ks[0], (Cout, Cin, K), jnp.float32)
    w2_v = 0.01 * jax.random.normal(ks[1], (Cout, Cout, K), jnp.float32)
    wd = 0.01 * jax.random.normal(ks[2], (Cout, Cin, 1), jnp.float32)
    params = {
        "w1_v": w1_v,
        "w1_g": jnp.sqrt(jnp.sum(w1_v * w1_v, axis=(1, 2))),  # weight_norm g init
        "b1": 0.05 * jax.random.normal(ks[3], (Cout,), jnp.float32),
        "w2_v": w2_v,
        "w2_g": jnp.sqrt(jnp.sum(w2_v * w2_v, axis=(1, 2))),
        "b2": 0.05 * jax.random.normal(ks[4], (Cout,), jnp.float32),
        "wd": wd,
        "bd": 0.05 * jax.random.normal(ks[5], (Cout,), jnp.float32),
    }
    x = jax.random.normal(ks[6], (N, Cin, L), jnp.float32)

    out = temporal_block_pallas(x, params, kernel_size=K, dilation=DIL,
                                padding=PAD, tile_l=16)
    out = jax.block_until_ready(out)

    ref = temporal_block_ref(x, params, kernel_size=K, dilation=DIL,
                             padding=PAD)
    assert out.shape == (N, Cout, L), out.shape
    # bf16 MXU operands -> compare against the f32 reference with loose tol.
    assert jnp.allclose(out, ref, atol=1e-2, rtol=1e-2), \
        float(jnp.max(jnp.abs(out - ref)))

    print("KERNEL_OK")
</pallas_src>

<mosaic_0001>
module attributes {stable_mosaic.version = 11 : i64} {
  func.func @_temporal_block_kernel(%arg0: i32, %arg1: i32, %arg2: memref<1x16x128xbf16, #tpu.memory_space<vmem>>, %arg3: memref<384x128xbf16, #tpu.memory_space<vmem>>, %arg4: memref<1x128xf32, #tpu.memory_space<vmem>>, %arg5: memref<384x128xbf16, #tpu.memory_space<vmem>>, %arg6: memref<1x128xf32, #tpu.memory_space<vmem>>, %arg7: memref<128x128xbf16, #tpu.memory_space<vmem>>, %arg8: memref<1x128xf32, #tpu.memory_space<vmem>>, %arg9: memref<1x16x128xf32, #tpu.memory_space<vmem>>, %arg10: memref<20x128xbf16, #tpu.memory_space<vmem>>, %arg11: memref<20x128xbf16, #tpu.memory_space<vmem>>) attributes {dimension_semantics = [#tpu.dimension_semantics<parallel>, #tpu.dimension_semantics<arbitrary>], iteration_bounds = array<i64: 2, 2>, scalar_prefetch = 0 : i64, scratch_operands = 2 : i64, tpu.core_type = #tpu.core_type<tc>, window_params = [{transform_indices = @transform_0, window_bounds = array<i64: 1, 16, 128>}, {pipeline_mode = #tpu.pipeline_mode<synchronous>, transform_indices = @transform_1, window_bounds = array<i64: 384, 128>}, {pipeline_mode = #tpu.pipeline_mode<synchronous>, transform_indices = @transform_2, window_bounds = array<i64: 1, 128>}, {pipeline_mode = #tpu.pipeline_mode<synchronous>, transform_indices = @transform_3, window_bounds = array<i64: 384, 128>}, {pipeline_mode = #tpu.pipeline_mode<synchronous>, transform_indices = @transform_4, window_bounds = array<i64: 1, 128>}, {pipeline_mode = #tpu.pipeline_mode<synchronous>, transform_indices = @transform_5, window_bounds = array<i64: 128, 128>}, {pipeline_mode = #tpu.pipeline_mode<synchronous>, transform_indices = @transform_6, window_bounds = array<i64: 1, 128>}, {transform_indices = @transform_7, window_bounds = array<i64: 1, 16, 128>}]} {
    %c0_i32 = arith.constant 0 : i32
    %0 = arith.cmpi eq, %arg1, %c0_i32 : i32
    %1 = arith.extui %0 : i1 to i32
    %c0_i32_0 = arith.constant 0 : i32
    %2 = arith.cmpi ne, %1, %c0_i32_0 : i32
    scf.if %2 {
      %cst_47 = arith.constant 0.000000e+00 : bf16
      %53 = vector.broadcast %cst_47 : bf16 to vector<4x128xbf16>
      %c0_48 = arith.constant 0 : index
      %c0_49 = arith.constant 0 : index
      %54 = vector.load %arg10[%c0_48, %c0_49] : memref<20x128xbf16, #tpu.memory_space<vmem>>, vector<4x128xbf16>
      tpu.vector_store %arg10[%c0_48, %c0_49], %53 {strides = array<i32>} : memref<20x128xbf16, #tpu.memory_space<vmem>>, vector<4x128xbf16>,
      %cst_50 = arith.constant 0.000000e+00 : bf16
      %55 = vector.broadcast %cst_50 : bf16 to vector<4x128xbf16>
      %c0_51 = arith.constant 0 : index
      %c0_52 = arith.constant 0 : index
      %56 = vector.load %arg11[%c0_51, %c0_52] : memref<20x128xbf16, #tpu.memory_space<vmem>>, vector<4x128xbf16>
      tpu.vector_store %arg11[%c0_51, %c0_52], %55 {strides = array<i32>} : memref<20x128xbf16, #tpu.memory_space<vmem>>, vector<4x128xbf16>,
    } else {
    }
    %c0 = arith.constant 0 : index
    %c0_1 = arith.constant 0 : index
    %c0_2 = arith.constant 0 : index
    %3 = vector.load %arg2[%c0, %c0_1, %c0_2] : memref<1x16x128xbf16, #tpu.memory_space<vmem>>, vector<1x16x128xbf16>
    %4 = vector.shape_cast %3 : vector<1x16x128xbf16> to vector<16x128xbf16>
    %c4 = arith.constant 4 : index
    %c0_3 = arith.constant 0 : index
    %5 = vector.load %arg10[%c4, %c0_3] : memref<20x128xbf16, #tpu.memory_space<vmem>>, vector<16x128xbf16>
    tpu.vector_store %arg10[%c4, %c0_3], %4 {strides = array<i32>} : memref<20x128xbf16, #tpu.memory_space<vmem>>, vector<16x128xbf16>,
    %c0_4 = arith.constant 0 : index
    %c0_5 = arith.constant 0 : index
    %6 = vector.load %arg10[%c0_4, %c0_5] : memref<20x128xbf16, #tpu.memory_space<vmem>>, vector<16x128xbf16>
    %c2 = arith.constant 2 : index
    %c0_6 = arith.constant 0 : index
    %7 = vector.load %arg10[%c2, %c0_6] : memref<20x128xbf16, #tpu.memory_space<vmem>>, vector<16x128xbf16>
    %c4_7 = arith.constant 4 : index
    %c0_8 = arith.constant 0 : index
    %8 = vector.load %arg10[%c4_7, %c0_8] : memref<20x128xbf16, #tpu.memory_space<vmem>>, vector<16x128xbf16>
    %9 = tpu.concatenate %6, %7, %8 in 1 : vector<16x128xbf16>, vector<16x128xbf16>, vector<16x128xbf16> -> vector<16x384xbf16>
    %c0_9 = arith.constant 0 : index
    %c0_10 = arith.constant 0 : index
    %10 = vector.load %arg3[%c0_9, %c0_10] : memref<384x128xbf16, #tpu.memory_space<vmem>>, vector<384x128xbf16>
    %cst = arith.constant dense<0.000000e+00> : vector<16x128xf32>
    %11 = tpu.matmul %9, %10, %cst {dimension_numbers = #tpu.dot_dimension_numbers<[1], [0], [0], [1], [0, 0, 1, 1], [], []>} : vector<16x384xbf16>, vector<384x128xbf16>, vector<16x128xf32> -> vector<16x128xf32>
    %c0_11 = arith.constant 0 : index
    %c0_12 = arith.constant 0 : index
    %12 = vector.load %arg4[%c0_11, %c0_12] : memref<1x128xf32, #tpu.memory_space<vmem>>, vector<1x128xf32>
    %13 = vector.shape_cast %12 : vector<1x128xf32> to vector<128xf32>
    %14 = vector.shape_cast %13 : vector<128xf32> to vector<1x128xf32>
    %15 = vector.broadcast %14 : vector<1x128xf32> to vector<16x128xf32>
    %16 = arith.addf %11, %15 : vector<16x128xf32>
    %cst_13 = arith.constant 0.000000e+00 : f32
    %17 = vector.broadcast %cst_13 : f32 to vector<16x128xf32>
    %18 = arith.maximumf %16, %17 : vector<16x128xf32>
    %19 = arith.truncf %18 : vector<16x128xf32> to vector<16x128xbf16>
    %c4_14 = arith.constant 4 : index
    %c0_15 = arith.constant 0 : index
    %20 = vector.load %arg11[%c4_14, %c0_15] : memref<20x128xbf16, #tpu.memory_space<vmem>>, vector<16x128xbf16>
    tpu.vector_store %arg11[%c4_14, %c0_15], %19 {strides = array<i32>} : memref<20x128xbf16, #tpu.memory_space<vmem>>, vector<16x128xbf16>,
    %c0_16 = arith.constant 0 : index
    %c0_17 = arith.constant 0 : index
    %21 = vector.load %arg11[%c0_16, %c0_17] : memref<20x128xbf16, #tpu.memory_space<vmem>>, vector<16x128xbf16>
    %c2_18 = arith.constant 2 : index
    %c0_19 = arith.constant 0 : index
    %22 = vector.load %arg11[%c2_18, %c0_19] : memref<20x128xbf16, #tpu.memory_space<vmem>>, vector<16x128xbf16>
    %c4_20 = arith.constant 4 : index
    %c0_21 = arith.constant 0 : index
    %23 = vector.load %arg11[%c4_20, %c0_21] : memref<20x128xbf16, #tpu.memory_space<vmem>>, vector<16x128xbf16>
    %24 = tpu.concatenate %21, %22, %23 in 1 : vector<16x128xbf16>, vector<16x128xbf16>, vector<16x128xbf16> -> vector<16x384xbf16>
    %c0_22 = arith.constant 0 : index
    %c0_23 = arith.constant 0 : index
    %25 = vector.load %arg5[%c0_22, %c0_23] : memref<384x128xbf16, #tpu.memory_space<vmem>>, vector<384x128xbf16>
    %cst_24 = arith.constant dense<0.000000e+00> : vector<16x128xf32>
    %26 = tpu.matmul %24, %25, %cst_24 {dimension_numbers = #tpu.dot_dimension_numbers<[1], [0], [0], [1], [0, 0, 1, 1], [], []>} : vector<16x384xbf16>, vector<384x128xbf16>, vector<16x128xf32> -> vector<16x128xf32>
    %c0_25 = arith.constant 0 : index
    %c0_26 = arith.constant 0 : index
    %27 = vector.load %arg6[%c0_25, %c0_26] : memref<1x128xf32, #tpu.memory_space<vmem>>, vector<1x128xf32>
    %28 = vector.shape_cast %27 : vector<1x128xf32> to vector<128xf32>
    %29 = vector.shape_cast %28 : vector<128xf32> to vector<1x128xf32>
    %30 = vector.broadcast %29 : vector<1x128xf32> to vector<16x128xf32>
    %31 = arith.addf %26, %30 : vector<16x128xf32>
    %cst_27 = arith.constant 0.000000e+00 : f32
    %32 = vector.broadcast %cst_27 : f32 to vector<16x128xf32>
    %33 = arith.maximumf %31, %32 : vector<16x128xf32>
    %c0_28 = arith.constant 0 : index
    %c0_29 = arith.constant 0 : index
    %c0_30 = arith.constant 0 : index
    %34 = vector.load %arg2[%c0_28, %c0_29, %c0_30] : memref<1x16x128xbf16, #tpu.memory_space<vmem>>, vector<1x16x128xbf16>
    %35 = vector.shape_cast %34 : vector<1x16x128xbf16> to vector<16x128xbf16>
    %c0_31 = arith.constant 0 : index
    %c0_32 = arith.constant 0 : index
    %36 = vector.load %arg7[%c0_31, %c0_32] : memref<128x128xbf16, #tpu.memory_space<vmem>>, vector<128x128xbf16>
    %cst_33 = arith.constant dense<0.000000e+00> : vector<16x128xf32>
    %37 = tpu.matmul %35, %36, %cst_33 {dimension_numbers = #tpu.dot_dimension_numbers<[1], [0], [0], [1], [0, 0, 1, 1], [], []>} : vector<16x128xbf16>, vector<128x128xbf16>, vector<16x128xf32> -> vector<16x128xf32>
    %c0_34 = arith.constant 0 : index
    %c0_35 = arith.constant 0 : index
    %38 = vector.load %arg8[%c0_34, %c0_35] : memref<1x128xf32, #tpu.memory_space<vmem>>, vector<1x128xf32>
    %39 = vector.shape_cast %38 : vector<1x128xf32> to vector<128xf32>
    %40 = vector.shape_cast %39 : vector<128xf32> to vector<1x128xf32>
    %41 = vector.broadcast %40 : vector<1x128xf32> to vector<16x128xf32>
    %42 = arith.addf %37, %41 : vector<16x128xf32>
    %43 = arith.addf %33, %42 : vector<16x128xf32>
    %cst_36 = arith.constant 0.000000e+00 : f32
    %44 = vector.broadcast %cst_36 : f32 to vector<16x128xf32>
    %45 = arith.maximumf %43, %44 : vector<16x128xf32>
    %c0_37 = arith.constant 0 : index
    %c0_38 = arith.constant 0 : index
    %c0_39 = arith.constant 0 : index
    %46 = vector.load %arg9[%c0_37, %c0_38, %c0_39] : memref<1x16x128xf32, #tpu.memory_space<vmem>>, vector<1x16x128xf32>
    %47 = vector.shape_cast %46 : vector<1x16x128xf32> to vector<16x128xf32>
    %48 = vector.shape_cast %45 : vector<16x128xf32> to vector<1x16x128xf32>
    tpu.vector_store %arg9[%c0_37, %c0_38, %c0_39], %48 {strides = array<i32>} : memref<1x16x128xf32, #tpu.memory_space<vmem>>, vector<1x16x128xf32>,
    %c16 = arith.constant 16 : index
    %c0_40 = arith.constant 0 : index
    %49 = vector.load %arg10[%c16, %c0_40] : memref<20x128xbf16, #tpu.memory_space<vmem>>, vector<4x128xbf16>
    %c0_41 = arith.constant 0 : index
    %c0_42 = arith.constant 0 : index
    %50 = vector.load %arg10[%c0_41, %c0_42] : memref<20x128xbf16, #tpu.memory_space<vmem>>, vector<4x128xbf16>
    tpu.vector_store %arg10[%c0_41, %c0_42], %49 {strides = array<i32>} : memref<20x128xbf16, #tpu.memory_space<vmem>>, vector<4x128xbf16>,
    %c16_43 = arith.constant 16 : index
    %c0_44 = arith.constant 0 : index
    %51 = vector.load %arg11[%c16_43, %c0_44] : memref<20x128xbf16, #tpu.memory_space<vmem>>, vector<4x128xbf16>
    %c0_45 = arith.constant 0 : index
    %c0_46 = arith.constant 0 : index
    %52 = vector.load %arg11[%c0_45, %c0_46] : memref<20x128xbf16, #tpu.memory_space<vmem>>, vector<4x128xbf16>
    tpu.vector_store %arg11[%c0_45, %c0_46], %51 {strides = array<i32>} : memref<20x128xbf16, #tpu.memory_space<vmem>>, vector<4x128xbf16>,
    return
  }
  func.func @transform_0(%arg0: i32, %arg1: i32) -> (i32, i32, i32) {
    %c0_i32 = arith.constant 0 : i32
    %c0_i32_0 = arith.constant 0 : i32
    return %arg0, %arg1, %c0_i32 : i32, i32, i32
  }
  func.func @transform_1(%arg0: i32, %arg1: i32) -> (i32, i32) {
    %c0_i32 = arith.constant 0 : i32
    %c0_i32_0 = arith.constant 0 : i32
    %c0_i32_1 = arith.constant 0 : i32
    return %c0_i32, %c0_i32_0 : i32, i32
  }
  func.func @transform_2(%arg0: i32, %arg1: i32) -> (i32, i32) {
    %c0_i32 = arith.constant 0 : i32
    %c0_i32_0 = arith.constant 0 : i32
    %c0_i32_1 = arith.constant 0 : i32
    return %c0_i32, %c0_i32_0 : i32, i32
  }
  func.func @transform_3(%arg0: i32, %arg1: i32) -> (i32, i32) {
    %c0_i32 = arith.constant 0 : i32
    %c0_i32_0 = arith.constant 0 : i32
    %c0_i32_1 = arith.constant 0 : i32
    return %c0_i32, %c0_i32_0 : i32, i32
  }
  func.func @transform_4(%arg0: i32, %arg1: i32) -> (i32, i32) {
    %c0_i32 = arith.constant 0 : i32
    %c0_i32_0 = arith.constant 0 : i32
    %c0_i32_1 = arith.constant 0 : i32
    return %c0_i32, %c0_i32_0 : i32, i32
  }
  func.func @transform_5(%arg0: i32, %arg1: i32) -> (i32, i32) {
    %c0_i32 = arith.constant 0 : i32
    %c0_i32_0 = arith.constant 0 : i32
    %c0_i32_1 = arith.constant 0 : i32
    return %c0_i32, %c0_i32_0 : i32, i32
  }
  func.func @transform_6(%arg0: i32, %arg1: i32) -> (i32, i32) {
    %c0_i32 = arith.constant 0 : i32
    %c0_i32_0 = arith.constant 0 : i32
    %c0_i32_1 = arith.constant 0 : i32
    return %c0_i32, %c0_i32_0 : i32, i32
  }
  func.func @transform_7(%arg0: i32, %arg1: i32) -> (i32, i32, i32) {
    %c0_i32 = arith.constant 0 : i32
    %c0_i32_0 = arith.constant 0 : i32
    return %arg0, %arg1, %c0_i32 : i32, i32, i32
  }
}

</mosaic_0001>

<bundles_post_ra>
// kernel: tpu_custom_call.1
= control target key start
LH: loop header
LB: loop body
LE: loop exit
PB: predicated region body
PF: predicated region fallthrough
CT: control target
= control target key end

     0   :  { %s2138_s0 = inlined_call_operand.hbm [shape: bf16[2,32,128], index: 0, kind: input, shape index: {}]   ;;  %s2139_s1 = inlined_call_operand.hbm [shape: bf16[384,128], index: 1, kind: input, shape index: {}]   ;;  %s2140_s2 = inlined_call_operand.vmem [shape: f32[1,128], index: 2, kind: input, shape index: {}]   ;;  %s2141_s3 = inlined_call_operand.hbm [shape: bf16[384,128], index: 3, kind: input, shape index: {}]   ;;  %s2142_s4 = inlined_call_operand.vmem [shape: f32[1,128], index: 4, kind: input, shape index: {}]   ;;  %s2143_s5 = inlined_call_operand.hbm [shape: bf16[128,128], index: 5, kind: input, shape index: {}]   ;;  %s2144_s6 = inlined_call_operand.vmem [shape: f32[1,128], index: 6, kind: input, shape index: {}]   ;;  %s2145_s7 = inlined_call_operand.hbm [shape: f32[2,32,128], index: 7, kind: output, shape index: {}]  }
   0x1   :  { %2156 = sst [smem:[#allocation22_spill]] %s2139_s1 }
   0x2   :  { %2157 = sst [smem:[#allocation23_spill]] %s2141_s3 }
   0x3   :  { %2158 = sst [smem:[#allocation24_spill]] %s2143_s5 }
   0x4   :  { %2159 = sst [smem:[#allocation25_spill]] %s2144_s6 }
   0x5   :  { %2160 = sst [smem:[#allocation26_spill]] %s2145_s7 }
   0x6   :  { %12 = vsyncpa [#allocation5], 0 }
   0x7   :  { %14 = vsyncpa [#allocation5 + $0x1], 0 }
   0x8   :  { %15 = vsyncpa [#allocation8], 0 }
   0x9   :  { %16 = vsyncpa [#allocation11], 0 }
   0xa   :  { %17 = vsyncpa [#allocation6], 0 }
   0xb   :  { %19 = vsyncpa [#allocation6 + $0x1], 0  ;;  %s1902_s24 = smov 0   ;;  %s1904_s25 = smov 0  }
   0xc   :  { %s1906_s26 = smov 0   ;;  %s1908_s27 = smov 0  }
   0xd   :  { %s1910_s28 = smov 0   ;;  %s1912_s29 = smov 0  }
   0xe   :  { %s1914_s30 = smov 0   ;;  %s1916_s8 = smov 0  }
   0xf LB: > { %2161 = sst [smem:[#allocation17_spill]] %s1824_s24  ;;  %s2146_s9 = sadd.s32 4294967295, %s1852_s8   ;;  %s1852_s8 = sphi %s1916_s8, %s25_s8   ;;  %s1848_s30 = sphi %s1914_s30, %s2194_s30   ;;  %s1844_s29 = sphi %s1912_s29, %s2193_s29   ;;  %s1840_s28 = sphi %s1910_s28, %s2192_s28   ;;  %s1836_s27 = sphi %s1908_s27, %s2191_s27   ;;  %s1832_s26 = sphi %s1906_s26, %s2190_s26   ;;  %s1828_s25 = sphi %s1904_s25, %s2189_s25   ;;  %s1824_s24 = sphi %s1902_s24, %s2188_s24  }
  0x10   : > { %s1193_s10 = sadd.s32 4294967294, %s1852_s8   ;;  %p59_p0 = scmp.ne.s32.totalorder %s1828_s25, %s1824_s24 }
  0x11   : > { %p1948_p1 = scmp.eq.s32.totalorder %s2146_s9, 0  ;;  %p217_p2 = scmp.eq.s32.totalorder %s1193_s10, 3 }
  0x12   : > { %p1194_p4 = scmp.ge.s32.totalorder %s1852_s8, 1  ;;  %p224_p6 = scmp.lt.s32.totalorder %s1852_s8, 5 }
  0x13   : > { %p1954_p3 = por %p1948_p1, %p59_p0  ;;  %p1959_p5 = por %p217_p2, %p59_p0 }
  0x14   : > { %s2166_s1 = sld [smem:[#allocation22_spill]]  ;;  %p1967_p7 = pnand %p1194_p4, %p224_p6 }
  0x15   : > { %s2164_s13 = scalar_select %p1959_p5, 1, 0 }
  0x16   : > { %p1525_p8 = pneg %p1967_p7  ;;  %s1854_s18 = smov [#allocation7]  }
  0x17   : > { %2165 = sst [smem:[#allocation18_spill]] %s2164_s13  ;;  %s237_s19 = sshll.u32 %s1854_s18, 4  ;;  %s238_s19 = int_to_ptr.vmem [resolvable:$true] %s237_s19 }
  0x18   : > { %p1975_p9 = pnand %p1525_p8, %p1948_p1  ;;  %s2169_s3 = sld [smem:[#allocation23_spill]] }
  0x19   : > { %s2147_s10 = smov 64   ;;  %s2148_s14 = smov 4  }
  0x1a   : > { %s235_s16 = sshll.u32 %s2166_s1, 4  ;;  %s1857_s15 = smov [#allocation9]   ;;  %s236_s16 = int_to_ptr.hbm [resolvable:$true] %s235_s16 }
  0x1b   : > { %1528 = dma.hbm_to_vmem [thread:$0]  (!%p1975_p9), %s236_s16, 3072, %s238_s19, [#allocation8], %s2147_s10, %s2147_s10, %s2148_s14  }
  0x1c   : > { %s254_s18 = sshll.u32 %s1857_s15, 4  ;;  %s2170_s5 = sld [smem:[#allocation24_spill]]  ;;  %s255_s18 = int_to_ptr.vmem [resolvable:$true] %s254_s18 }
  0x1d   : > { %s1858_s1 = smov [#allocation10]   ;;  %s34_s16 = sadd.s32 1, %s1844_s29 }
  0x1e   : > { %s252_s23 = sshll.u32 %s2169_s3, 4  ;;  %s271_s3 = sshll.u32 %s1858_s1, 4  ;;  %s253_s23 = int_to_ptr.hbm [resolvable:$true] %s252_s23  ;;  %s272_s3 = int_to_ptr.vmem [resolvable:$true] %s271_s3 }
  0x1f   : > { %1531 = dma.hbm_to_vmem [thread:$0]  (!%p1975_p9), %s253_s23, 3072, %s255_s18, [#allocation8], %s2147_s10, %s2147_s10, %s2148_s14  }
  0x20   : > { %p35_p10 = scmp.ge.s32.totalorder %s34_s16, 2  ;;  %s37_s19 = sadd.s32 1, %s1848_s30 }
  0x21   : > { %s2171_s15 = sadd.s32 4294967295, %s1852_s8   ;;  %p53_p12 = scmp.ne.s32.totalorder %s1832_s26, %s1828_s25 }
  0x22   : > { %s269_s9 = sshll.u32 %s2170_s5, 4  ;;  %p211_p11 = scmp.eq.s32.totalorder %s2171_s15, 3  ;;  %s270_s9 = int_to_ptr.hbm [resolvable:$true] %s269_s9 }
  0x23   : > { %1534 = dma.hbm_to_vmem [thread:$0]  (!%p1975_p9), %s270_s9, 1024, %s272_s3, [#allocation11], %s2147_s10, %s2147_s10, %s2148_s14  }
  0x24   : > { %s2196_s16 = smov (%p35_p10, %s34_s16), 0  ;;  %s2198_s19 = smov (!%p35_p10, %s37_s19), %s1848_s30 }
  0x25   : > { %2172 = sst [smem:[#allocation19_spill]] %s2196_s16  ;;  %s46_s1 = sadd.s32 1, %s1832_s26 }
  0x26   : > { %p54_p13 = scmp.eq.s32.totalorder %s1852_s8, 0  ;;  %p39_p0 = scmp.ge.s32.totalorder %s2198_s19, 2 }
  0x27   : > { %p2011_p2 = por %p211_p11, %p53_p12  ;;  %s42_s9 = ssub.s32 %s1844_s29, %s2196_s16 }
  0x28   : > { %p2017_p4 = por %p54_p13, %p53_p12  ;;  %s2200_s19 = smov (%p39_p0, %s2198_s19), 0 }
  0x29   : > { %s2173_s3 = scalar_select %p2011_p2, 1, 0 }
  0x2a   : > { %2176 = sst [smem:[#allocation21_spill]] %s2200_s19  ;;  %p1546_p6 = scmp.lt.s32.totalorder %s1852_s8, 4 }
  0x2b   : > { %2174 = sst [smem:[#allocation20_spill]] %s2173_s3  ;;  %s288_s23 = sand.u32 1, %s1832_s26  }
  0x2c   : > { %s41_s18 = ssub.s32 %s1848_s30, %s2200_s19  ;;  %s1200_s21 = sshll.u32 %s1844_s29, 1 }
  0x2d   : > { %s43_s22 = sor.u32 %s42_s9, %s41_s18  ;;  %s1199_s15 = sshll.u32 %s288_s23, 3 }
  0x2e   : > { %p44_p8 = scmp.eq.s32.totalorder %s43_s22, 0  ;;  %s1201_s10 = sshll.u32 %s1848_s30, 2 }
  0x2f   : > { %s292_s14 = scalar_lea.vmem [#allocation4], %s1199_s15  ;;  %s297_s13 = sadd.s32 %s1201_s10, %s1200_s21 }
  0x30   : > { %s302_s5 = sshll.u32 %s292_s14, 4  ;;  %s1202_s24 = sshll.u32 %s297_s13, 2  ;;  %s303_s5 = int_to_ptr.vmem [resolvable:$true] %s302_s5 }
  0x31   : > { %s2030_s16 = scalar_select %p44_p8, %s1832_s26, %s46_s1  }
  0x32   : > { %p1536_p9 = pnand %p1546_p6, %p2017_p4  ;;  %s299_s6 = scalar_lea.hbm %s2138_s0, %s1202_s24 }
  0x33   : > { %s300_s19 = sshll.u32 %s299_s6, 4  ;;  %s289_s9 = scalar_lea.sflag [#allocation5], %s288_s23  ;;  %s301_s19 = int_to_ptr.hbm [resolvable:$true] %s300_s19 }
  0x34   : > { %s2177_s18 = smov 4   ;;  %s2178_s22 = smov 64  }
  0x35   : > { %1538 = dma.hbm_to_vmem [thread:$0]  (!%p1536_p9), %s301_s19, 128, %s303_s5, %s289_s9, %s2178_s22, %s2178_s22, %s2177_s18  }
  0x36   : > { %314 = sbr.rel (%p1967_p7) target bundleno = 422 (0x1a6), region = 48  ;;  %s2045_s13 = sand.u32 (!%p1967_p7), 1, %s1828_s25  }
  0x37   : > { %s1204_s10 = sshll.u32 (!%p1967_p7), %s2045_s13, 3  ;;  %s317_s7 = scalar_lea.sflag (!%p1967_p7), [#allocation5], %s2045_s13 }
  0x38   : > { %s2049_s24 = scalar_lea.vmem (!%p1967_p7), [#allocation4], %s1204_s10 }
  0x3b   : > { %1807 = dma.done.wait (%p1954_p3), %s317_s7, 128  }
  0x3c   : > { %1809 = vsyncadd (%p1954_p3), %s317_s7, 4294967168 }
  0x3d   : > { %1811 = dma.done.wait (%p1948_p1), [#allocation8], 6144  }
  0x3e   : > { %1813 = vsyncadd (%p1948_p1), [#allocation8], 4294961152 }
  0x3f   : > { %1815 = dma.done.wait (%p1948_p1), [#allocation11], 1024  }
  0x40   : > { %1817 = vsyncadd (%p1948_p1), [#allocation11], 4294966272  ;;  %s1208_s5 = sshll.u32 %s2045_s13, 4  ;;  %p1209_p7 = scmp.ne.s32.totalorder %s1836_s27, 0 }
  0x41   : > { %s2064_s6 = scalar_lea.vmem [#allocation12], %s1208_s5 }
  0x42   : > { %373 = sbr.rel (%p1209_p7) target bundleno = 74 (0x4a), region = 68 }
  0x47   : > { %v1859_v0 = vmov 0  }
  0x48   : > { %374 = vst [vmem:[#allocation2] sm:$0x3] %v1859_v0 }
  0x49   : > { %375 = vst [vmem:[#allocation3] sm:$0x3] %v1859_v0 }
  0x4a PF: > { %v1451_v1 = vld [vmem:[#allocation7 + $0x38] sm:$0xff]  ;;  %v1450_v4 = vld [vmem:[#allocation7 + $0x30] sm:$0xff]  ;;  %v1449_v7 = vld [vmem:[#allocation7 + $0x28] sm:$0xff]  ;;  %vm380_vm0 = vcmask 1041408   ;;  %vm381_vm1 = vcmask 1045508   ;;  %vm412_vm3 = vcmask 1046528  }
  0x4b   : > { %v1459_v2 = vld [vmem:[#allocation7 + $0x78] sm:$0xff]  ;;  %624 = vmatpush.bf16.msra.mxu0 %v1451_v1  ;;  %v1458_v5 = vld [vmem:[#allocation7 + $0x70] sm:$0xff]  ;;  %v1457_v8 = vld [vmem:[#allocation7 + $0x68] sm:$0xff]  ;;  %vm423_vm4 = vcmask 1045504   ;;  %s2181_s3 = sld [smem:[#allocation25_spill]]  ;;  %s1439_s20 = sshll.u32 %s1836_s27, 1 }
  0x4c   : > { %v1467_v3 = vld [vmem:[#allocation7 + $0xb8] sm:$0xff]  ;;  %638 = vmatpush.bf16.msra.mxu1 %v1459_v2  ;;  %v1466_v6 = vld [vmem:[#allocation7 + $0xb0] sm:$0xff]  ;;  %v1465_v9 = vld [vmem:[#allocation7 + $0xa8] sm:$0xff]  ;;  %s1440_s23 = sshll.u32 %s1840_s28, 2  ;;  %s2182_s18 = sld [smem:[#allocation26_spill]] }
  0x4d   : > { %652 = vmatpush.bf16.msra.mxu2 %v1467_v3  ;;  %v376_v10 = vld [vmem:[%s2049_s24] sm:$0xf]  ;;  %v377_v11 = vld [vmem:[%s2049_s24 + $0x4] sm:$0xf]  ;;  %v1448_v12 = vld [vmem:[#allocation7 + $0x20] sm:$0xff]  ;;  %s1067_s21 = sadd.s32 %s1440_s23, %s1439_s20  ;;  %s1070_s10 = sshll.u32 %s2064_s6, 4  ;;  %s1071_s10 = int_to_ptr.vmem [resolvable:$true] %s1070_s10 }
  0x4e   : > { %v1456_v13 = vld [vmem:[#allocation7 + $0x60] sm:$0xff]  ;;  %v383_v14 = vrot.slane %v376_v10, 6  ;;  %v385_v15 = vrot.slane %v377_v11, 6  ;;  %vm2069_vm2 = vmor %vm380_vm0, %vm381_vm1  ;;  %v1447_v21 = vld [vmem:[#allocation7 + $0x18] sm:$0xff]  ;;  %s1441_s15 = sshll.u32 %s1067_s21, 3 }
  0x4f   : > { %625 = vmatpush.bf16.msra.mxu0 %v1450_v4  ;;  %v1464_v17 = vld [vmem:[#allocation7 + $0xa0] sm:$0xff]  ;;  %v1455_v22 = vld [vmem:[#allocation7 + $0x58] sm:$0xff]  ;;  %v1446_v24 = vld [vmem:[#allocation7 + $0x10] sm:$0xff] }
  0x50   : > { %639 = vmatpush.bf16.msra.mxu1 %v1458_v5  ;;  %v384_v18 = vrot.slane %v383_v14, 4  ;;  %v387_v19 = vrot.slane %v385_v15, 4  ;;  %391 = vst [vmem:[#allocation2] sm:$0xc] %v383_v14  ;;  %v1463_v23 = vld [vmem:[#allocation7 + $0x98] sm:$0xff]  ;;  %v1454_v25 = vld [vmem:[#allocation7 + $0x50] sm:$0xff] }
  0x51   : > { %653 = vmatpush.bf16.msra.mxu2 %v1466_v6  ;;  %v1462_v28 = vld [vmem:[#allocation7 + $0x90] sm:$0xff]  ;;  %v1445_v37 = vld [vmem:[#allocation7 + $0x8] sm:$0xff]  ;;  %v1444_v45 = vld [vmem:[#allocation7] sm:$0xff] }
  0x52   : > { %v386_v20 = vsel %vm2069_vm2, %v384_v18, %v385_v15  ;;  %393 = vst [vmem:[#allocation2 + $0x8] sm:$0x3] %v387_v19  ;;  %v1453_v38 = vld [vmem:[#allocation7 + $0x48] sm:$0xff]  ;;  %v1452_v46 = vld [vmem:[#allocation7 + $0x40] sm:$0xff]  ;;  %v1500_v52 = vld [vmem:[#allocation10 + $0x38] sm:$0xff]  ;;  %s1069_s28 = scalar_lea.hbm %s2182_s18, %s1441_s15  ;;  %s1766_s14 = scalar_lea.hbm %s2182_s18, 64 }
  0x53   : > { %626 = vmatpush.bf16.msra.mxu0 %v1449_v7  ;;  %392 = vst [vmem:[#allocation2 + $0x4] sm:$0xf] %v386_v20  ;;  %v1461_v40 = vld [vmem:[#allocation7 + $0x88] sm:$0xff]  ;;  %v1460_v49 = vld [vmem:[#allocation7 + $0x80] sm:$0xff]  ;;  %v1475_v55 = vld [vmem:[#allocation9 + $0x38] sm:$0xff]  ;;  %s1072_s7 = sshll.u32 %s1069_s28, 4  ;;  %s1073_s7 = int_to_ptr.hbm [resolvable:$true] %s1072_s7 }
  0x54   : > { %640 = vmatpush.bf16.msra.mxu1 %v1457_v8  ;;  %911 = vmatpush.bf16.msra.mxu3 %v1475_v55  ;;  %v1499_v56 = vld [vmem:[#allocation10 + $0x30] sm:$0xff]  ;;  %v1498_v58 = vld [vmem:[#allocation10 + $0x28] sm:$0xff]  ;;  %v1483_v60 = vld [vmem:[#allocation9 + $0x78] sm:$0xff]  ;;  %s1760_s5 = sshra.s32 %s1073_s7, 4  ;;  %s1761_s5 = int_to_ptr.hbm [resolvable:$true] %s1760_s5 }
  0x55   : > { %654 = vmatpush.bf16.msra.mxu2 %v1465_v9  ;;  %v1474_v57 = vld [vmem:[#allocation9 + $0x30] sm:$0xff]  ;;  %v1473_v59 = vld [vmem:[#allocation9 + $0x28] sm:$0xff]  ;;  %v1491_v61 = vld [vmem:[#allocation9 + $0xb8] sm:$0xff]  ;;  %s1762_s11 = scalar_lea.hbm %s1761_s5, 16  ;;  %p1767_p11 = scmp.lt.s32.totalorder %s1761_s5, %s2182_s18 }
  0x56   : > { %v1497_v62 = vld [vmem:[#allocation10 + $0x20] sm:$0xff]  ;;  %v1482_v0 = vld [vmem:[#allocation9 + $0x70] sm:$0xff]  ;;  %v1496_v2 = vld [vmem:[#allocation10 + $0x18] sm:$0xff]  ;;  %p1763_p1 = scmp.ne.s32.totalorder %s1761_s5, %s1762_s11  ;;  %p1768_p12 = scmp.lt.s32.totalorder %s1766_s14, %s1762_s11 }
  0x57   : > { %627 = vmatpush.bf16.msra.mxu0 %v1448_v12  ;;  %v396_v26 = vld [vmem:[#allocation2] sm:$0xe]  ;;  %v1472_v63 = vld [vmem:[#allocation9 + $0x20] sm:$0xff]  ;;  %v1490_v1 = vld [vmem:[#allocation9 + $0xb0] sm:$0xff] }
  0x58   : > { %641 = vmatpush.bf16.msra.mxu1 %v1456_v13  ;;  %v398_v27 = vld [vmem:[#allocation2] sm:$0xc]  ;;  %v408_v29 = vunpack.c.l.b16 %v396_v26  ;;  %912 = vmatpush.bf16.msra.mxu3 %v1474_v57  ;;  %v1481_v4 = vld [vmem:[#allocation9 + $0x68] sm:$0xff]  ;;  %v1495_v6 = vld [vmem:[#allocation10 + $0x10] sm:$0xff]  ;;  %p1764_p3 = pnand %p1763_p1, %p2011_p2  ;;  %p1769_p13 = por %p1768_p12, %p1767_p11 }
  0x59   : > { %655 = vmatpush.bf16.msra.mxu2 %v1464_v17  ;;  %v1051_v30 = vld [vmem:[#allocation2 + $0x8] sm:$0x3]  ;;  %v419_v33 = vunpack.c.l.b16 %v398_v27  ;;  %v1471_v3 = vld [vmem:[#allocation9 + $0x18] sm:$0xff]  ;;  %v1489_v5 = vld [vmem:[#allocation9 + $0xa8] sm:$0xff] }
  0x5a   : > { %v397_v31 = vld [vmem:[#allocation2 + $0x8] sm:$0x1]  ;;  %v1502_v34 = vld [vmem:[#allocation2] sm:$0xff]   ;;  %v1470_v7 = vld [vmem:[#allocation9 + $0x10] sm:$0xff]  ;;  %p1765_p10 = pneg %p1764_p3 }
  0x5b   : > { %628 = vmatpush.bf16.msra.mxu0 %v1447_v21  ;;  %v399_v32 = vld [vmem:[#allocation2 + $0x8] sm:$0x3]  ;;  %v409_v35 = vunpack.c.l.b16 %v397_v31  ;;  %v1504_v39 = vunpack.c.h.b16 %v1502_v34  ;;  %1052 = vst [vmem:[#allocation2] sm:$0x3] %v1051_v30  ;;  %v1494_v10 = vld [vmem:[#allocation10 + $0x8] sm:$0xff]  ;;  %v1479_v12 = vld [vmem:[#allocation9 + $0x58] sm:$0xff] }
  0x5c   : > { %642 = vmatpush.bf16.msra.mxu1 %v1455_v22  ;;  %v420_v36 = vunpack.c.l.b16 %v399_v32  ;;  %913 = vmatpush.bf16.msra.mxu3 %v1473_v59  ;;  %v1480_v8 = vld [vmem:[#allocation9 + $0x60] sm:$0xff]  ;;  %v1469_v11 = vld [vmem:[#allocation9 + $0x8] sm:$0xff]  ;;  %v1487_v13 = vld [vmem:[#allocation9 + $0x98] sm:$0xff]  ;;  %p1770_p0 = pnand %p1769_p13, %p1765_p10 }
  0x5d   : > { %656 = vmatpush.bf16.msra.mxu2 %v1463_v23  ;;  %v411_v41 = vpack.c.b16 %v409_v35, %v409_v35  ;;  %v410_v43 = vpack.c.b16 %v1504_v39, %v408_v29  ;;  %v421_v44 = vpack.c.b16 %v1504_v39, %v419_v33  ;;  %v1488_v9 = vld [vmem:[#allocation9 + $0xa0] sm:$0xff]  ;;  %v1478_v17 = vld [vmem:[#allocation9 + $0x50] sm:$0xff]  ;;  %v1623_v20 = vld [vmem:[%s2140_s2] ss:$0 sm:$0xff] }
  0x5e   : > { %v422_v42 = vpack.c.b16 %v420_v36, %v420_v36  ;;  %v1493_v14 = vld [vmem:[#allocation10] sm:$0xff]  ;;  %v1486_v18 = vld [vmem:[#allocation9 + $0x90] sm:$0xff]  ;;  %v1477_v22 = vld [vmem:[#allocation9 + $0x48] sm:$0xff] }
  0x5f   : > { %629 = vmatpush.bf16.msra.mxu0 %v1446_v24  ;;  %v413_v47 = vrot.slane %v410_v43, 1  ;;  %v414_v48 = vrot.slane %v411_v41, 1  ;;  %v424_v50 = vrot.slane %v421_v44, 2  ;;  %v1468_v15 = vld [vmem:[#allocation9] sm:$0xff]  ;;  %v1492_v19 = vld [vmem:[%s2049_s24] sm:$0xff]  ;;  %v1485_v23 = vld [vmem:[#allocation9 + $0x88] sm:$0xff] }
  0x60   : > { %643 = vmatpush.bf16.msra.mxu1 %v1454_v25  ;;  %v425_v51 = vrot.slane %v422_v42, 2  ;;  %914 = vmatpush.bf16.msra.mxu3 %v1472_v63  ;;  %v1476_v26 = vld [vmem:[#allocation9 + $0x40] sm:$0xff]  ;;  %s1056_s24 = scalar_lea.sflag [#allocation6], %s2045_s13 }
  0x61   : > { %657 = vmatpush.bf16.msra.mxu2 %v1462_v28  ;;  %v415_v53 = vsel %vm412_vm3, %v413_v47, %v414_v48  ;;  %v1484_v27 = vld [vmem:[#allocation9 + $0x80] sm:$0xff] }
  0x62   : > { %v426_v54 = vsel %vm423_vm4, %v424_v50, %v425_v51 }
  0x63   : > { %630 = vmatpush.bf16.msra.mxu0 %v1445_v37 }
  0x64   : > { %644 = vmatpush.bf16.msra.mxu1 %v1453_v38  ;;  %915 = vmatpush.bf16.msra.mxu3 %v1471_v3 }
  0x65   : > { %658 = vmatpush.bf16.msra.mxu2 %v1461_v40 }
  0x67   : > { %631 = vmatpush.bf16.msra.mxu0 %v1444_v45 }
  0x68   : > { %645 = vmatpush.bf16.msra.mxu1 %v1452_v46  ;;  %916 = vmatpush.bf16.msra.mxu3 %v1470_v7 }
  0x69   : > { %659 = vmatpush.bf16.msra.mxu2 %v1460_v49 }
  0x6a   : > { %632 = vmatmul.bf16.vlgmr.msra.gmra.mxu0 %v1502_v34 }
  0x6b   : > { %646 = vmatmul.bf16.vlgmr.msra.gmra.mxu1 %v415_v53  ;;  %925 = vmatpush.bf16.msrb.mxu0 %v1483_v60 }
  0x6c   : > { %660 = vmatmul.bf16.vlgmr.msra.gmra.mxu2 %v426_v54  ;;  %939 = vmatpush.bf16.msrb.mxu1 %v1491_v61 }
  0x6d   : > { %1031 = vmatpush.bf16.msrb.mxu2 %v1500_v52  ;;  %917 = vmatpush.bf16.msra.mxu3 %v1469_v11 }
  0x6f   : > { %926 = vmatpush.bf16.msrb.mxu0 %v1482_v0 }
  0x70   : > { %940 = vmatpush.bf16.msrb.mxu1 %v1490_v1 }
  0x71   : > { %1032 = vmatpush.bf16.msrb.mxu2 %v1499_v56  ;;  %918 = vmatpush.bf16.msra.mxu3 %v1468_v15 }
  0x73   : > { %927 = vmatpush.bf16.msrb.mxu0 %v1481_v4  ;;  %v1624_v4 = vld [vmem:[%s2181_s3] ss:$0 sm:$0xff] }
  0x74   : > { %941 = vmatpush.bf16.msrb.mxu1 %v1489_v5 }
  0x75   : > { %1033 = vmatpush.bf16.msrb.mxu2 %v1498_v58 }
  0x77   : > { %928 = vmatpush.bf16.msrb.mxu0 %v1480_v8 }
  0x78   : > { %942 = vmatpush.bf16.msrb.mxu1 %v1488_v9 }
  0x79   : > { %1034 = vmatpush.bf16.msrb.mxu2 %v1497_v62 }
  0x7b   : > { %929 = vmatpush.bf16.msrb.mxu0 %v1479_v12 }
  0x7c   : > { %943 = vmatpush.bf16.msrb.mxu1 %v1487_v13 }
  0x7d   : > { %1035 = vmatpush.bf16.msrb.mxu2 %v1496_v2  ;;  %v1625_v2 = vld [vmem:[%s2142_s4] ss:$0 sm:$0xff] }
  0x7f   : > { %930 = vmatpush.bf16.msrb.mxu0 %v1478_v17 }
  0x80   : > { %944 = vmatpush.bf16.msrb.mxu1 %v1486_v18 }
  0x81   : > { %1036 = vmatpush.bf16.msrb.mxu2 %v1495_v6 }
  0x83   : > { %931 = vmatpush.bf16.msrb.mxu0 %v1477_v22 }
  0x84   : > { %945 = vmatpush.bf16.msrb.mxu1 %v1485_v23 }
  0x85   : > { %1037 = vmatpush.bf16.msrb.mxu2 %v1494_v10 }
  0x87   : > { %932 = vmatpush.bf16.msrb.mxu0 %v1476_v26 }
  0x88   : > { %946 = vmatpush.bf16.msrb.mxu1 %v1484_v27 }
  0x89   : > { %1038 = vmatpush.bf16.msrb.mxu2 %v1493_v14 }
  0x8c   : > { %1039 = vmatmul.bf16.vlgmr.msrb.gmra.mxu2 %v1492_v19 }
  0xe7   : > { %v633_v21 = vpop.f32.mrf.mxu0 }
  0xe8   : > { %v634_v24 = vadd.f32 %v1623_v20, %v633_v21  ;;  %v647_v25 = vpop.f32.mrf.mxu1 }
  0xea   : > { %v648_v28 = vadd.f32 %v647_v25, %v634_v24 }
  0xef   : > { %v661_v29 = vpop.f32.mrf.mxu2  ;;  %v635_v31 = vpop.f32.mrf.mxu0 }
  0xf0   : > { %v662_v30 = vadd.f32 %v661_v29, %v648_v28  ;;  %v636_v33 = vadd.f32 %v1623_v20, %v635_v31  ;;  %v649_v35 = vpop.f32.mrf.mxu1 }
  0xf2   : > { %v666_v32 = vmax.f32 %v662_v30, 0.0  ;;  %v650_v37 = vadd.f32 %v649_v35, %v636_v33 }
  0xf4   : > { %v668_v34 = vpack.c.bf16 %v666_v32, %v666_v32 }
  0xf6   : > { %v672_v36 = vrot.slane %v668_v34, 6 }
  0xf7   : > { %v663_v38 = vpop.f32.mrf.mxu2 }
  0xf8   : > { %680 = vst [vmem:[#allocation3] sm:$0xc] %v672_v36  ;;  %v664_v39 = vadd.f32 %v663_v38, %v650_v37  ;;  %v673_v42 = vrot.slane %v672_v36, 4 }
  0xfa   : > { %v667_v40 = vmax.f32 %v664_v39, 0.0 }
  0xfc   : > { %v669_v41 = vpack.c.bf16 %v667_v40, %v667_v40 }
  0xfe   : > { %v674_v43 = vrot.slane %v669_v41, 6 }
  0xff   : > { %v685_v46 = vld [vmem:[#allocation3] sm:$0xe] }
 0x100   : > { %v675_v44 = vsel %vm2069_vm2, %v673_v42, %v674_v43  ;;  %v676_v45 = vrot.slane %v674_v43, 4  ;;  %v687_v47 = vld [vmem:[#allocation3] sm:$0xc]  ;;  %v697_v50 = vunpack.c.l.b16 %v685_v46 }
 0x101   : > { %681 = vst [vmem:[#allocation3 + $0x4] sm:$0xf] %v675_v44  ;;  %v707_v51 = vunpack.c.l.b16 %v687_v47 }
 0x102   : > { %682 = vst [vmem:[#allocation3 + $0x8] sm:$0x3] %v676_v45 }
 0x108   : > { %v1506_v48 = vld [vmem:[#allocation3] sm:$0xff]  }
 0x109   : > { %v1508_v49 = vunpack.c.h.b16 %v1506_v48  ;;  %919 = vmatmul.bf16.vlgmr.msra.gmra.mxu3 %v1506_v48  ;;  %v1053_v52 = vld [vmem:[#allocation3 + $0x8] sm:$0x3] }
 0x10a   : > { %v686_v53 = vld [vmem:[#allocation3 + $0x8] sm:$0x1]  ;;  %1054 = vst [vmem:[#allocation3] sm:$0x3] %v1053_v52 }
 0x10b   : > { %v688_v54 = vld [vmem:[#allocation3 + $0x8] sm:$0x3]  ;;  %v698_v55 = vunpack.c.l.b16 %v686_v53  ;;  %v699_v57 = vpack.c.b16 %v1508_v49, %v697_v50  ;;  %v709_v58 = vpack.c.b16 %v1508_v49, %v707_v51 }
 0x10c   : > { %v708_v56 = vunpack.c.l.b16 %v688_v54 }
 0x10d   : > { %v700_v16 = vpack.c.b16 %v698_v55, %v698_v55  ;;  %v701_v60 = vrot.slane %v699_v57, 1  ;;  %v711_v61 = vrot.slane %v709_v58, 2 }
 0x10e   : > { %v710_v59 = vpack.c.b16 %v708_v56, %v708_v56 }
 0x10f   : > { %v702_v62 = vrot.slane %v700_v16, 1  ;;  %v1040_v5 = vpop.f32.mrf.mxu2 }
 0x110   : > { %v712_v63 = vrot.slane %v710_v59, 2  ;;  %v1041_v10 = vadd.f32 %v1624_v4, %v1040_v5 }
 0x111   : > { %v703_v0 = vsel %vm412_vm3, %v701_v60, %v702_v62 }
 0x112   : > { %v713_v1 = vsel %vm423_vm4, %v711_v61, %v712_v63  ;;  %933 = vmatmul.bf16.vlgmr.msrb.gmra.mxu0 %v703_v0 }
 0x113   : > { %947 = vmatmul.bf16.vlgmr.msrb.gmra.mxu1 %v713_v1 }
 0x117   : > { %v1042_v20 = vpop.f32.mrf.mxu2 }
 0x118   : > { %v1043_v23 = vadd.f32 %v1624_v4, %v1042_v20 }
 0x18c   : > { %v920_v3 = vpop.f32.mrf.mxu3 }
 0x18d   : > { %v921_v6 = vadd.f32 %v1625_v2, %v920_v3 }
 0x18f   : > { %v934_v7 = vpop.f32.mrf.mxu0 }
 0x190   : > { %v948_v8 = vpop.f32.mrf.mxu1  ;;  %v935_v9 = vadd.f32 %v934_v7, %v921_v6 }
 0x192   : > { %v949_v11 = vadd.f32 %v948_v8, %v935_v9 }
 0x194   : > { %v953_v12 = vmax.f32 %v949_v11, 0.0  ;;  %v922_v13 = vpop.f32.mrf.mxu3 }
 0x195   : > { %v923_v15 = vadd.f32 %v1625_v2, %v922_v13 }
 0x196   : > { %v1045_v14 = vadd.f32 %v1041_v10, %v953_v12 }
 0x197   : > { %v936_v17 = vpop.f32.mrf.mxu0 }
 0x198   : > { %v1047_v18 = vmax.f32 %v1045_v14, 0.0  ;;  %v937_v19 = vadd.f32 %v936_v17, %v923_v15  ;;  %v950_v21 = vpop.f32.mrf.mxu1 }
 0x19a   : > { %1049 = vst [vmem:[%s2064_s6] sm:$0xff] %v1047_v18  ;;  %v951_v22 = vadd.f32 %v950_v21, %v937_v19 }
 0x19c   : > { %v954_v24 = vmax.f32 %v951_v22, 0.0 }
 0x19e   : > { %v1046_v25 = vadd.f32 %v1043_v23, %v954_v24 }
 0x1a0   : > { %v1048_v26 = vmax.f32 %v1046_v25, 0.0 }
 0x1a2   : > { %1050 = vst [vmem:[%s2064_s6 + $0x8] sm:$0xff] %v1048_v26 }
 0x1a3   : > { %1773 = shalt.err (!%p1770_p0)
}
 0x1a4   : > { %s1860_s13 = smov 128   ;;  %s1861_s6 = smov 8  }
 0x1a5   : > { %1523 = dma.vmem_to_hbm [thread:$0]  (%p2011_p2), %s1071_s10, 256, %s1073_s7, %s1056_s24, %s1860_s13, %s1860_s13, %s1861_s6  }
 0x1a6 PF: > { %s2184_s3 = sld [smem:[#allocation17_spill]]  ;;  %p1550_p4 = scmp.ge.s32.totalorder %s1852_s8, 2 }
 0x1a8   : > { %p1540_p6 = pnand %p1550_p4, %p1959_p5 }
 0x1aa   : > { %p1541_p8 = pneg %p1540_p6 }
 0x1ac   : > { %s1087_s23 = sand.u32 1, %s2184_s3  }
 0x1ad   : > { %s1088_s21 = scalar_lea.sflag [#allocation6], %s1087_s23 }
 0x1ae   : > { %1819 = dma.done.wait (%p1541_p8), %s1088_s21, 256  }
 0x1af   : > { %1821 = vsyncadd (%p1541_p8), %s1088_s21, 4294967040  ;;  %s25_s8 = sadd.s32 1, %s1852_s8   ;;  %s2186_s15 = sld [smem:[#allocation19_spill]] }
 0x1b0   : > { %p22_p9 = scmp.ge.s32.totalorder %s25_s8, 6   ;;  %s2187_s9 = sld [smem:[#allocation21_spill]] }
 0x1b1   : > { %s2188_s24 = smov %s1828_s25  ;;  %s2189_s25 = smov %s1832_s26 }
 0x1b2   : > { %s2190_s26 = smov %s2030_s16  ;;  %s2191_s27 = smov %s1844_s29 }
 0x1b3   : > { %s2192_s28 = smov %s1848_s30  ;;  %24 = sbr.rel (!%p22_p9) target bundleno = 15 (0xf), region = 109 }
 0x1b5   : > { %s2193_s29 = smov %s2186_s15 }
 0x1b6   : > { %s2194_s30 = smov %s2187_s9 }
 0x1b8   :  { %1094 = vsyncpa [#allocation5], 1 }
 0x1b9   :  { %1096 = vsyncpa [#allocation5 + $0x1], 1 }
 0x1ba   :  { %1097 = vsyncpa [#allocation8], 1 }
 0x1bb   :  { %1098 = vsyncpa [#allocation11], 1 }
 0x1bc   :  { %1099 = vsyncpa [#allocation6], 1 }
 0x1bd   :  { %1101 = vsyncpa [#allocation6 + $0x1], 1 }

</bundles_post_ra>
